<compile_context>
chip_gen: v5e
topology: v5e:2x2
jax: 0.10.0
libtpu: 0.0.40
codegen_flags: <defaults>
</compile_context>

<pallas_src>
import collections
import functools

import jax
import jax.numpy as jnp
from jax.experimental import pallas as pl
from jax.experimental.pallas import tpu as pltpu

LEAKY_SLOPE = 0.01  # torch.nn.LeakyReLU default negative_slope


def _round_up(x, m):
    return (x + m - 1) // m * m


# ---------------------------------------------------------------------------
# Hardware introspection (defensive: conservative defaults if unavailable).
# ---------------------------------------------------------------------------
def _tpu_vmem_capacity_bytes():
    try:
        cap = int(pltpu.get_tpu_info().vmem_capacity_bytes)
        if cap > 0:
            return cap
    except Exception:
        pass
    return 64 << 20  # conservative (v7x-sized) default


def _tpu_num_tensorcores():
    try:
        info = pltpu.get_tpu_info()
        for attr in ("num_cores", "core_count", "num_tensorcores", "tensor_cores"):
            v = getattr(info, attr, None)
            if v:
                return int(v)
    except Exception:
        pass
    try:
        v = getattr(jax.devices()[0], "num_cores", None)
        if v:
            return int(v)
    except Exception:
        pass
    return 1


# ---------------------------------------------------------------------------
# Kernel body: one batch tile per grid step, all layers fused.
# ---------------------------------------------------------------------------
def _fused_mlp_kernel(*refs, n_layers, compute_dtype):
    """refs = (x_ref, w0, b0, w1, b1, ..., wn, bn, o_ref)."""
    x_ref = refs[0]
    o_ref = refs[-1]
    wb = refs[1:-1]

    h = x_ref[...]                                    # (tm, in_pad) compute_dtype
    for i in range(n_layers):
        w = wb[2 * i][...]                            # (prev_pad, fo_pad) compute_dtype
        b = wb[2 * i + 1][...]                        # (1, fo_pad) f32
        # MXU matmul with f32 accumulation; f32 bias/activation on the VPU.
        y = jnp.dot(h, w, preferred_element_type=jnp.float32) + b
        if i < n_layers - 1:
            y = jnp.maximum(y, LEAKY_SLOPE * y)       # LeakyReLU: single vmax
            h = y.astype(compute_dtype)               # next MXU operand
        else:
            o_ref[...] = y.astype(o_ref.dtype)        # lane-dense (128-mult) store


# ---------------------------------------------------------------------------
# One-time weight preparation (hoisted out of the forward path).
# ---------------------------------------------------------------------------
PreparedMLP = collections.namedtuple(
    "PreparedMLP",
    ["weights", "biases", "feat_pads", "in_dim", "out_dim", "compute_dtype"])


def prepare_mlp_params(params, compute_dtype=jnp.bfloat16):
    """Zero-pad every (w (in,out), b (1,out)) to 128-lane multiples and cast the
    weights to the MXU compute dtype. Call once; reuse across forwards."""
    in_dim = params[0][0].shape[0]
    out_dim = params[-1][0].shape[1]
    feat_pads = [_round_up(in_dim, 128)]
    weights, biases = [], []
    prev_pad = feat_pads[0]
    for (w, b) in params:
        fi, fo = w.shape
        fo_pad = _round_up(fo, 128)
        w_p = (jnp.zeros((prev_pad, fo_pad), jnp.float32)
               .at[:fi, :fo].set(w.astype(jnp.float32))
               .astype(compute_dtype))
        b_p = (jnp.zeros((1, fo_pad), jnp.float32)
               .at[:, :fo].set(jnp.reshape(b, (1, fo)).astype(jnp.float32)))
        weights.append(w_p)
        biases.append(b_p)
        feat_pads.append(fo_pad)
        prev_pad = fo_pad
    return PreparedMLP(weights, biases, feat_pads, in_dim, out_dim, compute_dtype)


# ---------------------------------------------------------------------------
# Batch tiling & VMEM budget.
# ---------------------------------------------------------------------------
def _choose_batch_tile(B, *, tm_target=256, num_cores=1):
    """Return (B_pad, tm) with B_pad % tm == 0 and tm a multiple of 8, decoupled
    from B's divisors so large batches never collapse to tiny MXU-M tiles."""
    B8 = _round_up(max(int(B), 1), 8)
    if B8 <= tm_target:
        if num_cores >= 2 and B8 >= 128:
            # Two tiles -> the "parallel" axis shards across both TCs (v7x);
            # each half still keeps >= 64 MXU rows.
            tm = _round_up((B8 + 1) // 2, 8)
            return 2 * tm, tm
        return B8, B8
    # Multi-tile batch: prefer the full target tile; step down (>= 64 rows)
    # only when it meaningfully reduces padded-row waste.
    candidates = [t for t in (tm_target, tm_target // 2, tm_target // 4) if t >= 64]
    pads = {t: _round_up(B8, t) for t in candidates}
    min_pad = min(pads.values())
    tol = max(B8 // 8, 64)
    tm = max(t for t in candidates if pads[t] - min_pad <= tol)
    return pads[tm], tm


def _vmem_limit_bytes(prepared, tm, out_dtype, weight_buffers):
    """Explicit VMEM estimate: resident weights * buffer_count +
    double-buffered x/out tiles + live activation tile, clamped generation-aware."""
    cd_size = jnp.dtype(prepared.compute_dtype).itemsize
    out_size = jnp.dtype(out_dtype).itemsize
    weight_bytes = sum(int(w.size) * w.dtype.itemsize for w in prepared.weights)
    weight_bytes += sum(int(b.size) * b.dtype.itemsize for b in prepared.biases)
    in_pad, out_pad = prepared.feat_pads[0], prepared.feat_pads[-1]
    max_feat = max(prepared.feat_pads)
    tile_bytes = 2 * tm * in_pad * cd_size + 2 * tm * out_pad * out_size
    act_bytes = tm * max_feat * (4 + cd_size)  # live f32 activation + narrow MXU copy
    need = weight_buffers * weight_bytes + tile_bytes + act_bytes + (2 << 20)
    ceiling = int(0.6 * _tpu_vmem_capacity_bytes())  # ~38 MiB v7x, ~77 MiB v5e/v6e
    return int(min(max(need, 8 << 20), ceiling)), weight_bytes


# ---------------------------------------------------------------------------
# pallas_call builder + forward.
# ---------------------------------------------------------------------------
def _run_fused_mlp(prepared, x_p, B_pad, tm, out_dtype, single_buffer_weights):
    n_layers = len(prepared.weights)
    in_pad, out_pad = prepared.feat_pads[0], prepared.feat_pads[-1]

    use_sb = bool(single_buffer_weights) and hasattr(pl, "Buffered")

    def resident_spec(shape):
        # Constant index_map -> fetched once, VMEM-resident across batch tiles.
        if use_sb:
            return pl.BlockSpec(shape, lambda i: (0, 0),
                                pipeline_mode=pl.Buffered(1))
        return pl.BlockSpec(shape, lambda i: (0, 0))

    in_specs = [pl.BlockSpec((tm, in_pad), lambda i: (i, 0))]
    flat_inputs = [x_p]
    flops = 0
    prev_pad = in_pad
    for li in range(n_layers):
        fo_pad = prepared.feat_pads[li + 1]
        flat_inputs += [prepared.weights[li], prepared.biases[li]]
        in_specs += [resident_spec((prev_pad, fo_pad)),
                     resident_spec((1, fo_pad))]
        flops += 2 * B_pad * prev_pad * fo_pad
        prev_pad = fo_pad

    vmem_limit, weight_bytes = _vmem_limit_bytes(
        prepared, tm, out_dtype, weight_buffers=1 if use_sb else 2)
    bytes_accessed = (int(x_p.size) * x_p.dtype.itemsize + weight_bytes
                      + B_pad * out_pad * jnp.dtype(out_dtype).itemsize)

    kernel = functools.partial(_fused_mlp_kernel, n_layers=n_layers,
                               compute_dtype=prepared.compute_dtype)
    return pl.pallas_call(
        kernel,
        out_shape=jax.ShapeDtypeStruct((B_pad, out_pad), out_dtype),
        grid_spec=pltpu.PrefetchScalarGridSpec(
            num_scalar_prefetch=0,
            grid=(B_pad // tm,),
            in_specs=in_specs,
            out_specs=pl.BlockSpec((tm, out_pad), lambda i: (i, 0)),
        ),
        compiler_params=pltpu.CompilerParams(
            dimension_semantics=("parallel",),
            vmem_limit_bytes=vmem_limit,
        ),
        cost_estimate=pl.CostEstimate(
            flops=int(flops), transcendentals=0, bytes_accessed=int(bytes_accessed)),
    )(*flat_inputs)


def fused_mlp_forward(prepared, *args, out_dtype=jnp.float32):
    """prepared: PreparedMLP from prepare_mlp_params(). *args: 2-D arrays which
    are hstacked along axis 1 (torch.hstack on 2-D tensors == concat axis 1)."""
    x = jnp.concatenate([jnp.asarray(a) for a in args], axis=1)
    B, in_dim = x.shape
    assert in_dim == prepared.in_dim, (in_dim, prepared.in_dim)

    B_pad, tm = _choose_batch_tile(B, num_cores=_tpu_num_tensorcores())
    in_pad = prepared.feat_pads[0]

    # Per-call work is limited to padding/casting the activation.
    x_p = (jnp.zeros((B_pad, in_pad), prepared.compute_dtype)
           .at[:B, :in_dim].set(x.astype(prepared.compute_dtype)))

    try:
        out_p = _run_fused_mlp(prepared, x_p, B_pad, tm, out_dtype,
                               single_buffer_weights=True)
    except Exception:
        # Installed Pallas does not accept pipeline_mode=pl.Buffered(1):
        # fall back to default double-buffered resident weights.
        out_p = _run_fused_mlp(prepared, x_p, B_pad, tm, out_dtype,
                               single_buffer_weights=False)
    return out_p[:B, :prepared.out_dim]


# ---------------------------------------------------------------------------
# Init + references.
# ---------------------------------------------------------------------------
def init_mlp_params(key, input_dim, hidden_dims, output_dim):
    """Deterministic init mirroring nn.Linear shapes (stored as (in, out))."""
    params = []
    dims = [input_dim] + list(hidden_dims) + [output_dim]
    for i in range(len(dims) - 1):
        fan_in, fan_out = dims[i], dims[i + 1]
        key, kw, kb = jax.random.split(key, 3)
        bound = 1.0 / jnp.sqrt(jnp.float32(fan_in))
        w = jax.random.uniform(kw, (fan_in, fan_out), jnp.float32, -bound, bound)
        b = jax.random.uniform(kb, (1, fan_out), jnp.float32, -bound, bound)
        params.append((w, b))
    return params


def mlp_reference_f32(params, *args):
    x = jnp.concatenate([a.astype(jnp.float32) for a in args], axis=1)
    n = len(params)
    for i, (w, b) in enumerate(params):
        x = x @ w + jnp.reshape(b, (1, -1))
        if i < n - 1:
            x = jnp.where(x >= 0, x, LEAKY_SLOPE * x)
    return x


def mlp_reference_matched(params, *args, compute_dtype=jnp.bfloat16):
    """Same bf16-operand / f32-accumulate precision as the Pallas kernel."""
    x = jnp.concatenate([a.astype(jnp.float32) for a in args], axis=1)
    n = len(params)
    h = x.astype(compute_dtype)
    y = None
    for i, (w, b) in enumerate(params):
        y = jnp.dot(h, w.astype(compute_dtype),
                    preferred_element_type=jnp.float32) + jnp.reshape(b, (1, -1))
        if i < n - 1:
            y = jnp.where(y >= 0, y, LEAKY_SLOPE * y)
            h = y.astype(compute_dtype)
    return y


if __name__ == "__main__":
    key = jax.random.PRNGKey(0)
    k_params, k_x1, k_x2, k_x3, k_x4 = jax.random.split(key, 5)

    # two hstacked inputs of feature dims 3 and 5 -> input_dim = 8
    input_dim = 8
    hidden_dims = [32, 32]
    output_dim = 16

    params = init_mlp_params(k_params, input_dim, hidden_dims, output_dim)
    prepared = prepare_mlp_params(params)     # one-time weight pad/cast (hoisted)

    # Forward 1: tiny batch.
    batch = 2
    x1 = jax.random.normal(k_x1, (batch, 3), jnp.float32)
    x2 = jax.random.normal(k_x2, (batch, 5), jnp.float32)
    out = jax.block_until_ready(fused_mlp_forward(prepared, x1, x2))
    assert out.shape == (batch, output_dim), out.shape
    assert jnp.allclose(out, mlp_reference_matched(params, x1, x2),
                        atol=2e-3, rtol=2e-3), "batch=2: mismatch vs matched ref"
    assert jnp.allclose(out, mlp_reference_f32(params, x1, x2),
                        atol=5e-2, rtol=5e-2), "batch=2: mismatch vs f32 ref"

    # Forward 2: non-multiple-of-8 batch, reusing the prepared weights.
    batch2 = 33
    y1 = jax.random.normal(k_x3, (batch2, 3), jnp.float32)
    y2 = jax.random.normal(k_x4, (batch2, 5), jnp.float32)
    out2 = jax.block_until_ready(fused_mlp_forward(prepared, y1, y2))
    assert out2.shape == (batch2, output_dim), out2.shape
    assert jnp.allclose(out2, mlp_reference_matched(params, y1, y2),
                        atol=2e-3, rtol=2e-3), "batch=33: mismatch vs matched ref"
    assert jnp.allclose(out2, mlp_reference_f32(params, y1, y2),
                        atol=5e-2, rtol=5e-2), "batch=33: mismatch vs f32 ref"

    print("KERNEL_OK")
</pallas_src>

<mosaic_0001>
module attributes {stable_mosaic.version = 11 : i64} {
  func.func @_fused_mlp_kernel(%arg0: i32, %arg1: memref<8x128xbf16, #tpu.memory_space<vmem>>, %arg2: memref<128x128xbf16, #tpu.memory_space<vmem>>, %arg3: memref<1x128xf32, #tpu.memory_space<vmem>>, %arg4: memref<128x128xbf16, #tpu.memory_space<vmem>>, %arg5: memref<1x128xf32, #tpu.memory_space<vmem>>, %arg6: memref<128x128xbf16, #tpu.memory_space<vmem>>, %arg7: memref<1x128xf32, #tpu.memory_space<vmem>>, %arg8: memref<8x128xf32, #tpu.memory_space<vmem>>) attributes {dimension_semantics = [#tpu.dimension_semantics<parallel>], iteration_bounds = array<i64: 1>, scalar_prefetch = 0 : i64, scratch_operands = 0 : i64, tpu.core_type = #tpu.core_type<tc>, window_params = [{transform_indices = @transform_0, window_bounds = array<i64: 8, 128>}, {pipeline_mode = #tpu.pipeline_mode<synchronous>, transform_indices = @transform_1, window_bounds = array<i64: 128, 128>}, {pipeline_mode = #tpu.pipeline_mode<synchronous>, transform_indices = @transform_2, window_bounds = array<i64: 1, 128>}, {pipeline_mode = #tpu.pipeline_mode<synchronous>, transform_indices = @transform_3, window_bounds = array<i64: 128, 128>}, {pipeline_mode = #tpu.pipeline_mode<synchronous>, transform_indices = @transform_4, window_bounds = array<i64: 1, 128>}, {pipeline_mode = #tpu.pipeline_mode<synchronous>, transform_indices = @transform_5, window_bounds = array<i64: 128, 128>}, {pipeline_mode = #tpu.pipeline_mode<synchronous>, transform_indices = @transform_6, window_bounds = array<i64: 1, 128>}, {transform_indices = @transform_7, window_bounds = array<i64: 8, 128>}]} {
    %c0 = arith.constant 0 : index
    %c0_0 = arith.constant 0 : index
    %0 = vector.load %arg1[%c0, %c0_0] : memref<8x128xbf16, #tpu.memory_space<vmem>>, vector<8x128xbf16>
    %c0_1 = arith.constant 0 : index
    %c0_2 = arith.constant 0 : index
    %1 = vector.load %arg2[%c0_1, %c0_2] : memref<128x128xbf16, #tpu.memory_space<vmem>>, vector<128x128xbf16>
    %c0_3 = arith.constant 0 : index
    %c0_4 = arith.constant 0 : index
    %2 = vector.load %arg3[%c0_3, %c0_4] : memref<1x128xf32, #tpu.memory_space<vmem>>, vector<1x128xf32>
    %cst = arith.constant dense<0.000000e+00> : vector<8x128xf32>
    %3 = tpu.matmul %0, %1, %cst {dimension_numbers = #tpu.dot_dimension_numbers<[1], [0], [0], [1], [0, 0, 1, 1], [], []>} : vector<8x128xbf16>, vector<128x128xbf16>, vector<8x128xf32> -> vector<8x128xf32>
    %4 = vector.broadcast %2 : vector<1x128xf32> to vector<8x128xf32>
    %5 = arith.addf %3, %4 : vector<8x128xf32>
    %cst_5 = arith.constant 0.00999999977 : f32
    %6 = vector.broadcast %cst_5 : f32 to vector<8x128xf32>
    %7 = arith.mulf %6, %5 : vector<8x128xf32>
    %8 = arith.maximumf %5, %7 : vector<8x128xf32>
    %9 = arith.truncf %8 : vector<8x128xf32> to vector<8x128xbf16>
    %c0_6 = arith.constant 0 : index
    %c0_7 = arith.constant 0 : index
    %10 = vector.load %arg4[%c0_6, %c0_7] : memref<128x128xbf16, #tpu.memory_space<vmem>>, vector<128x128xbf16>
    %c0_8 = arith.constant 0 : index
    %c0_9 = arith.constant 0 : index
    %11 = vector.load %arg5[%c0_8, %c0_9] : memref<1x128xf32, #tpu.memory_space<vmem>>, vector<1x128xf32>
    %cst_10 = arith.constant dense<0.000000e+00> : vector<8x128xf32>
    %12 = tpu.matmul %9, %10, %cst_10 {dimension_numbers = #tpu.dot_dimension_numbers<[1], [0], [0], [1], [0, 0, 1, 1], [], []>} : vector<8x128xbf16>, vector<128x128xbf16>, vector<8x128xf32> -> vector<8x128xf32>
    %13 = vector.broadcast %11 : vector<1x128xf32> to vector<8x128xf32>
    %14 = arith.addf %12, %13 : vector<8x128xf32>
    %cst_11 = arith.constant 0.00999999977 : f32
    %15 = vector.broadcast %cst_11 : f32 to vector<8x128xf32>
    %16 = arith.mulf %15, %14 : vector<8x128xf32>
    %17 = arith.maximumf %14, %16 : vector<8x128xf32>
    %18 = arith.truncf %17 : vector<8x128xf32> to vector<8x128xbf16>
    %c0_12 = arith.constant 0 : index
    %c0_13 = arith.constant 0 : index
    %19 = vector.load %arg6[%c0_12, %c0_13] : memref<128x128xbf16, #tpu.memory_space<vmem>>, vector<128x128xbf16>
    %c0_14 = arith.constant 0 : index
    %c0_15 = arith.constant 0 : index
    %20 = vector.load %arg7[%c0_14, %c0_15] : memref<1x128xf32, #tpu.memory_space<vmem>>, vector<1x128xf32>
    %cst_16 = arith.constant dense<0.000000e+00> : vector<8x128xf32>
    %21 = tpu.matmul %18, %19, %cst_16 {dimension_numbers = #tpu.dot_dimension_numbers<[1], [0], [0], [1], [0, 0, 1, 1], [], []>} : vector<8x128xbf16>, vector<128x128xbf16>, vector<8x128xf32> -> vector<8x128xf32>
    %22 = vector.broadcast %20 : vector<1x128xf32> to vector<8x128xf32>
    %23 = arith.addf %21, %22 : vector<8x128xf32>
    %c0_17 = arith.constant 0 : index
    %c0_18 = arith.constant 0 : index
    %24 = vector.load %arg8[%c0_17, %c0_18] : memref<8x128xf32, #tpu.memory_space<vmem>>, vector<8x128xf32>
    tpu.vector_store %arg8[%c0_17, %c0_18], %23 {strides = array<i32>} : memref<8x128xf32, #tpu.memory_space<vmem>>, vector<8x128xf32>,
    return
  }
  func.func @transform_0(%arg0: i32) -> (i32, i32) {
    %c0_i32 = arith.constant 0 : i32
    %c0_i32_0 = arith.constant 0 : i32
    return %arg0, %c0_i32 : i32, i32
  }
  func.func @transform_1(%arg0: i32) -> (i32, i32) {
    %c0_i32 = arith.constant 0 : i32
    %c0_i32_0 = arith.constant 0 : i32
    %c0_i32_1 = arith.constant 0 : i32
    return %c0_i32, %c0_i32_0 : i32, i32
  }
  func.func @transform_2(%arg0: i32) -> (i32, i32) {
    %c0_i32 = arith.constant 0 : i32
    %c0_i32_0 = arith.constant 0 : i32
    %c0_i32_1 = arith.constant 0 : i32
    return %c0_i32, %c0_i32_0 : i32, i32
  }
  func.func @transform_3(%arg0: i32) -> (i32, i32) {
    %c0_i32 = arith.constant 0 : i32
    %c0_i32_0 = arith.constant 0 : i32
    %c0_i32_1 = arith.constant 0 : i32
    return %c0_i32, %c0_i32_0 : i32, i32
  }
  func.func @transform_4(%arg0: i32) -> (i32, i32) {
    %c0_i32 = arith.constant 0 : i32
    %c0_i32_0 = arith.constant 0 : i32
    %c0_i32_1 = arith.constant 0 : i32
    return %c0_i32, %c0_i32_0 : i32, i32
  }
  func.func @transform_5(%arg0: i32) -> (i32, i32) {
    %c0_i32 = arith.constant 0 : i32
    %c0_i32_0 = arith.constant 0 : i32
    %c0_i32_1 = arith.constant 0 : i32
    return %c0_i32, %c0_i32_0 : i32, i32
  }
  func.func @transform_6(%arg0: i32) -> (i32, i32) {
    %c0_i32 = arith.constant 0 : i32
    %c0_i32_0 = arith.constant 0 : i32
    %c0_i32_1 = arith.constant 0 : i32
    return %c0_i32, %c0_i32_0 : i32, i32
  }
  func.func @transform_7(%arg0: i32) -> (i32, i32) {
    %c0_i32 = arith.constant 0 : i32
    %c0_i32_0 = arith.constant 0 : i32
    return %arg0, %c0_i32 : i32, i32
  }
}

module attributes {stable_mosaic.version = 11 : i64} {
  func.func @_fused_mlp_kernel(%arg0: i32, %arg1: memref<8x128xbf16, #tpu.memory_space<vmem>>, %arg2: memref<128x128xbf16, #tpu.memory_space<vmem>>, %arg3: memref<1x128xf32, #tpu.memory_space<vmem>>, %arg4: memref<128x128xbf16, #tpu.memory_space<vmem>>, %arg5: memref<1x128xf32, #tpu.memory_space<vmem>>, %arg6: memref<128x128xbf16, #tpu.memory_space<vmem>>, %arg7: memref<1x128xf32, #tpu.memory_space<vmem>>, %arg8: memref<8x128xf32, #tpu.memory_space<vmem>>) attributes {dimension_semantics = [#tpu.dimension_semantics<parallel>], iteration_bounds = array<i64: 1>, scalar_prefetch = 0 : i64, scratch_operands = 0 : i64, tpu.core_type = #tpu.core_type<tc>, window_params = [{transform_indices = @transform_0, window_bounds = array<i64: 8, 128>}, {pipeline_mode = #tpu.pipeline_mode<synchronous>, transform_indices = @transform_1, window_bounds = array<i64: 128, 128>}, {pipeline_mode = #tpu.pipeline_mode<synchronous>, transform_indices = @transform_2, window_bounds = array<i64: 1, 128>}, {pipeline_mode = #tpu.pipeline_mode<synchronous>, transform_indices = @transform_3, window_bounds = array<i64: 128, 128>}, {pipeline_mode = #tpu.pipeline_mode<synchronous>, transform_indices = @transform_4, window_bounds = array<i64: 1, 128>}, {pipeline_mode = #tpu.pipeline_mode<synchronous>, transform_indices = @transform_5, window_bounds = array<i64: 128, 128>}, {pipeline_mode = #tpu.pipeline_mode<synchronous>, transform_indices = @transform_6, window_bounds = array<i64: 1, 128>}, {transform_indices = @transform_7, window_bounds = array<i64: 8, 128>}]} {
    %c0 = arith.constant 0 : index
    %c0_0 = arith.constant 0 : index
    %0 = vector.load %arg1[%c0, %c0_0] : memref<8x128xbf16, #tpu.memory_space<vmem>>, vector<8x128xbf16>
    %c0_1 = arith.constant 0 : index
    %c0_2 = arith.constant 0 : index
    %1 = vector.load %arg2[%c0_1, %c0_2] : memref<128x128xbf16, #tpu.memory_space<vmem>>, vector<128x128xbf16>
    %c0_3 = arith.constant 0 : index
    %c0_4 = arith.constant 0 : index
    %2 = vector.load %arg3[%c0_3, %c0_4] : memref<1x128xf32, #tpu.memory_space<vmem>>, vector<1x128xf32>
    %cst = arith.constant dense<0.000000e+00> : vector<8x128xf32>
    %3 = tpu.matmul %0, %1, %cst {dimension_numbers = #tpu.dot_dimension_numbers<[1], [0], [0], [1], [0, 0, 1, 1], [], []>} : vector<8x128xbf16>, vector<128x128xbf16>, vector<8x128xf32> -> vector<8x128xf32>
    %4 = vector.broadcast %2 : vector<1x128xf32> to vector<8x128xf32>
    %5 = arith.addf %3, %4 : vector<8x128xf32>
    %cst_5 = arith.constant 0.00999999977 : f32
    %6 = vector.broadcast %cst_5 : f32 to vector<8x128xf32>
    %7 = arith.mulf %6, %5 : vector<8x128xf32>
    %8 = arith.maximumf %5, %7 : vector<8x128xf32>
    %9 = arith.truncf %8 : vector<8x128xf32> to vector<8x128xbf16>
    %c0_6 = arith.constant 0 : index
    %c0_7 = arith.constant 0 : index
    %10 = vector.load %arg4[%c0_6, %c0_7] : memref<128x128xbf16, #tpu.memory_space<vmem>>, vector<128x128xbf16>
    %c0_8 = arith.constant 0 : index
    %c0_9 = arith.constant 0 : index
    %11 = vector.load %arg5[%c0_8, %c0_9] : memref<1x128xf32, #tpu.memory_space<vmem>>, vector<1x128xf32>
    %cst_10 = arith.constant dense<0.000000e+00> : vector<8x128xf32>
    %12 = tpu.matmul %9, %10, %cst_10 {dimension_numbers = #tpu.dot_dimension_numbers<[1], [0], [0], [1], [0, 0, 1, 1], [], []>} : vector<8x128xbf16>, vector<128x128xbf16>, vector<8x128xf32> -> vector<8x128xf32>
    %13 = vector.broadcast %11 : vector<1x128xf32> to vector<8x128xf32>
    %14 = arith.addf %12, %13 : vector<8x128xf32>
    %cst_11 = arith.constant 0.00999999977 : f32
    %15 = vector.broadcast %cst_11 : f32 to vector<8x128xf32>
    %16 = arith.mulf %15, %14 : vector<8x128xf32>
    %17 = arith.maximumf %14, %16 : vector<8x128xf32>
    %18 = arith.truncf %17 : vector<8x128xf32> to vector<8x128xbf16>
    %c0_12 = arith.constant 0 : index
    %c0_13 = arith.constant 0 : index
    %19 = vector.load %arg6[%c0_12, %c0_13] : memref<128x128xbf16, #tpu.memory_space<vmem>>, vector<128x128xbf16>
    %c0_14 = arith.constant 0 : index
    %c0_15 = arith.constant 0 : index
    %20 = vector.load %arg7[%c0_14, %c0_15] : memref<1x128xf32, #tpu.memory_space<vmem>>, vector<1x128xf32>
    %cst_16 = arith.constant dense<0.000000e+00> : vector<8x128xf32>
    %21 = tpu.matmul %18, %19, %cst_16 {dimension_numbers = #tpu.dot_dimension_numbers<[1], [0], [0], [1], [0, 0, 1, 1], [], []>} : vector<8x128xbf16>, vector<128x128xbf16>, vector<8x128xf32> -> vector<8x128xf32>
    %22 = vector.broadcast %20 : vector<1x128xf32> to vector<8x128xf32>
    %23 = arith.addf %21, %22 : vector<8x128xf32>
    %c0_17 = arith.constant 0 : index
    %c0_18 = arith.constant 0 : index
    %24 = vector.load %arg8[%c0_17, %c0_18] : memref<8x128xf32, #tpu.memory_space<vmem>>, vector<8x128xf32>
    tpu.vector_store %arg8[%c0_17, %c0_18], %23 {strides = array<i32>} : memref<8x128xf32, #tpu.memory_space<vmem>>, vector<8x128xf32>,
    return
  }
  func.func @transform_0(%arg0: i32) -> (i32, i32) {
    %c0_i32 = arith.constant 0 : i32
    %c0_i32_0 = arith.constant 0 : i32
    return %arg0, %c0_i32 : i32, i32
  }
  func.func @transform_1(%arg0: i32) -> (i32, i32) {
    %c0_i32 = arith.constant 0 : i32
    %c0_i32_0 = arith.constant 0 : i32
    %c0_i32_1 = arith.constant 0 : i32
    return %c0_i32, %c0_i32_0 : i32, i32
  }
  func.func @transform_2(%arg0: i32) -> (i32, i32) {
    %c0_i32 = arith.constant 0 : i32
    %c0_i32_0 = arith.constant 0 : i32
    %c0_i32_1 = arith.constant 0 : i32
    return %c0_i32, %c0_i32_0 : i32, i32
  }
  func.func @transform_3(%arg0: i32) -> (i32, i32) {
    %c0_i32 = arith.constant 0 : i32
    %c0_i32_0 = arith.constant 0 : i32
    %c0_i32_1 = arith.constant 0 : i32
    return %c0_i32, %c0_i32_0 : i32, i32
  }
  func.func @transform_4(%arg0: i32) -> (i32, i32) {
    %c0_i32 = arith.constant 0 : i32
    %c0_i32_0 = arith.constant 0 : i32
    %c0_i32_1 = arith.constant 0 : i32
    return %c0_i32, %c0_i32_0 : i32, i32
  }
  func.func @transform_5(%arg0: i32) -> (i32, i32) {
    %c0_i32 = arith.constant 0 : i32
    %c0_i32_0 = arith.constant 0 : i32
    %c0_i32_1 = arith.constant 0 : i32
    return %c0_i32, %c0_i32_0 : i32, i32
  }
  func.func @transform_6(%arg0: i32) -> (i32, i32) {
    %c0_i32 = arith.constant 0 : i32
    %c0_i32_0 = arith.constant 0 : i32
    %c0_i32_1 = arith.constant 0 : i32
    return %c0_i32, %c0_i32_0 : i32, i32
  }
  func.func @transform_7(%arg0: i32) -> (i32, i32) {
    %c0_i32 = arith.constant 0 : i32
    %c0_i32_0 = arith.constant 0 : i32
    return %arg0, %c0_i32 : i32, i32
  }
}

</mosaic_0001>

<bundles_post_ra>
// kernel: tpu_custom_call.1
= control target key start
LH: loop header
LB: loop body
LE: loop exit
PB: predicated region body
PF: predicated region fallthrough
CT: control target
= control target key end

     0   :  { %12 = vsyncpa [#allocation3], 0  ;;  %s687_s0 = inlined_call_operand.hbm [shape: bf16[8,128], index: 0, kind: input, shape index: {}]   ;;  %s688_s1 = inlined_call_operand.hbm [shape: bf16[128,128], index: 1, kind: input, shape index: {}]   ;;  %s689_s2 = inlined_call_operand.vmem [shape: f32[1,128], index: 2, kind: input, shape index: {}]   ;;  %s690_s3 = inlined_call_operand.hbm [shape: bf16[128,128], index: 3, kind: input, shape index: {}]   ;;  %s691_s4 = inlined_call_operand.vmem [shape: f32[1,128], index: 4, kind: input, shape index: {}]   ;;  %s692_s5 = inlined_call_operand.hbm [shape: bf16[128,128], index: 5, kind: input, shape index: {}]   ;;  %s693_s6 = inlined_call_operand.vmem [shape: f32[1,128], index: 6, kind: input, shape index: {}]   ;;  %s694_s7 = inlined_call_operand.hbm [shape: f32[8,128], index: 7, kind: output, shape index: {}]  }
   0x1   :  { %13 = vsyncpa [#allocation6], 0 }
   0x2   :  { %14 = vsyncpa [#allocation9], 0  ;;  %s31_s26 = sshll.u32 %s688_s1, 4  ;;  %s32_s26 = int_to_ptr.hbm [resolvable:$true] %s31_s26 }
   0x3   :  { %15 = vsyncpa [#allocation4], 0  ;;  %s616_s27 = smov [#allocation5]   ;;  %s21_s8 = sshll.u32 %s687_s0, 4  ;;  %s22_s8 = int_to_ptr.hbm [resolvable:$true] %s21_s8 }
   0x4   :  { %s33_s28 = sshll.u32 %s616_s27, 4  ;;  %s617_s9 = smov 64   ;;  %s34_s28 = int_to_ptr.vmem [resolvable:$true] %s33_s28 }
   0x5   :  { %s618_s10 = smov 4   ;;  %s619_s11 = smov [#allocation2]  }
   0x6   :  { %39 = dma.hbm_to_vmem [thread:$0]  %s32_s26, 1024, %s34_s28, [#allocation6], %s617_s9, %s617_s9, %s618_s10  }
   0x7   :  { %s23_s12 = sshll.u32 %s619_s11, 4  ;;  %s46_s15 = sshll.u32 %s690_s3, 4  ;;  %s24_s12 = int_to_ptr.vmem [resolvable:$true] %s23_s12  ;;  %s47_s15 = int_to_ptr.hbm [resolvable:$true] %s46_s15 }
   0x8   :  { %26 = dma.hbm_to_vmem [thread:$0]  %s22_s8, 64, %s24_s12, [#allocation3]  }
   0x9   :  { %s61_s17 = sshll.u32 %s692_s5, 4  ;;  %s620_s18 = smov [#allocation7]   ;;  %s62_s17 = int_to_ptr.hbm [resolvable:$true] %s61_s17 }
   0xa   :  { %s48_s19 = sshll.u32 %s620_s18, 4  ;;  %s621_s0 = smov [#allocation8]   ;;  %s49_s19 = int_to_ptr.vmem [resolvable:$true] %s48_s19 }
   0xb   :  { %54 = dma.hbm_to_vmem [thread:$0]  %s47_s15, 1024, %s49_s19, [#allocation6], %s617_s9, %s617_s9, %s618_s10  }
   0xc   :  { %s63_s20 = sshll.u32 %s621_s0, 4  ;;  %s64_s20 = int_to_ptr.vmem [resolvable:$true] %s63_s20 }
   0xd   :  { %69 = dma.hbm_to_vmem [thread:$0]  %s62_s17, 1024, %s64_s20, [#allocation9], %s617_s9, %s617_s9, %s618_s10  }
   0xe   :  { %608 = dma.done.wait [#allocation3], 64  }
   0xf   :  { %609 = vsyncadd [#allocation3], 4294967232 }
  0x10   :  { %610 = dma.done.wait [#allocation6], 2048  }
  0x11   :  { %611 = vsyncadd [#allocation6], 4294965248 }
  0x12   :  { %612 = dma.done.wait [#allocation9], 1024  }
  0x13   :  { %613 = vsyncadd [#allocation9], 4294966272  ;;  %v461_v0 = vld [vmem:[#allocation5 + $0x38] sm:$0xff]  ;;  %v460_v1 = vld [vmem:[#allocation5 + $0x30] sm:$0xff]  ;;  %s622_s24 = smov [#allocation10]   ;;  %s346_s28 = sshll.u32 %s694_s7, 4  ;;  %s347_s28 = int_to_ptr.hbm [resolvable:$true] %s346_s28 }
  0x14   :  { %157 = vmatpush.bf16.msra.mxu0 %v461_v0  ;;  %v469_v2 = vld [vmem:[#allocation7 + $0x38] sm:$0xff]  ;;  %v468_v3 = vld [vmem:[#allocation7 + $0x30] sm:$0xff]  ;;  %v459_v4 = vld [vmem:[#allocation5 + $0x28] sm:$0xff]  ;;  %s344_s25 = sshll.u32 %s622_s24, 4  ;;  %s345_s25 = int_to_ptr.vmem [resolvable:$true] %s344_s25 }
  0x15   :  { %241 = vmatpush.bf16.msra.mxu1 %v469_v2  ;;  %v467_v5 = vld [vmem:[#allocation7 + $0x28] sm:$0xff]  ;;  %v458_v6 = vld [vmem:[#allocation5 + $0x20] sm:$0xff]  ;;  %v457_v8 = vld [vmem:[#allocation5 + $0x18] sm:$0xff] }
  0x16   :  { %v466_v7 = vld [vmem:[#allocation7 + $0x20] sm:$0xff]  ;;  %v465_v9 = vld [vmem:[#allocation7 + $0x18] sm:$0xff]  ;;  %v456_v10 = vld [vmem:[#allocation5 + $0x10] sm:$0xff] }
  0x17   :  { %v464_v11 = vld [vmem:[#allocation7 + $0x10] sm:$0xff]  ;;  %v455_v12 = vld [vmem:[#allocation5 + $0x8] sm:$0xff]  ;;  %v454_v13 = vld [vmem:[#allocation5] sm:$0xff] }
  0x18   :  { %158 = vmatpush.bf16.msra.mxu0 %v460_v1  ;;  %v88_v14 = vld [vmem:[#allocation2] sm:$0xf]  ;;  %v463_v15 = vld [vmem:[#allocation7 + $0x8] sm:$0xff]  ;;  %v462_v16 = vld [vmem:[#allocation7] sm:$0xff] }
  0x19   :  { %242 = vmatpush.bf16.msra.mxu1 %v468_v3  ;;  %v477_v17 = vld [vmem:[#allocation8 + $0x38] sm:$0xff]  ;;  %v476_v18 = vld [vmem:[#allocation8 + $0x30] sm:$0xff]  ;;  %v475_v19 = vld [vmem:[#allocation8 + $0x28] sm:$0xff] }
  0x1a   :  { %325 = vmatpush.bf16.msra.mxu2 %v477_v17  ;;  %v474_v20 = vld [vmem:[#allocation8 + $0x20] sm:$0xff]  ;;  %v473_v21 = vld [vmem:[#allocation8 + $0x18] sm:$0xff]  ;;  %v472_v22 = vld [vmem:[#allocation8 + $0x10] sm:$0xff] }
  0x1b   :  { %v485_v23 = vld [vmem:[%s689_s2] ss:$0 sm:$0xff]  ;;  %v471_v30 = vld [vmem:[#allocation8 + $0x8] sm:$0xff]  ;;  %v470_v31 = vld [vmem:[#allocation8] sm:$0xff] }
  0x1c   :  { %159 = vmatpush.bf16.msra.mxu0 %v459_v4  ;;  %v486_v32 = vld [vmem:[%s691_s4] ss:$0 sm:$0xff] }
  0x1d   :  { %243 = vmatpush.bf16.msra.mxu1 %v467_v5  ;;  %v487_v39 = vld [vmem:[%s693_s6] ss:$0 sm:$0xff] }
  0x1e   :  { %326 = vmatpush.bf16.msra.mxu2 %v476_v18 }
  0x20   :  { %160 = vmatpush.bf16.msra.mxu0 %v458_v6 }
  0x21   :  { %244 = vmatpush.bf16.msra.mxu1 %v466_v7 }
  0x22   :  { %327 = vmatpush.bf16.msra.mxu2 %v475_v19 }
  0x24   :  { %161 = vmatpush.bf16.msra.mxu0 %v457_v8 }
  0x25   :  { %245 = vmatpush.bf16.msra.mxu1 %v465_v9 }
  0x26   :  { %328 = vmatpush.bf16.msra.mxu2 %v474_v20 }
  0x28   :  { %162 = vmatpush.bf16.msra.mxu0 %v456_v10 }
  0x29   :  { %246 = vmatpush.bf16.msra.mxu1 %v464_v11 }
  0x2a   :  { %329 = vmatpush.bf16.msra.mxu2 %v473_v21 }
  0x2c   :  { %163 = vmatpush.bf16.msra.mxu0 %v455_v12 }
  0x2d   :  { %247 = vmatpush.bf16.msra.mxu1 %v463_v15 }
  0x2e   :  { %330 = vmatpush.bf16.msra.mxu2 %v472_v22 }
  0x30   :  { %164 = vmatpush.bf16.msra.mxu0 %v454_v13 }
  0x31   :  { %248 = vmatpush.bf16.msra.mxu1 %v462_v16 }
  0x32   :  { %331 = vmatpush.bf16.msra.mxu2 %v471_v30 }
  0x33   :  { %165 = vmatmul.bf16.vlgmr.msra.gmra.mxu0 %v88_v14 }
  0x36   :  { %332 = vmatpush.bf16.msra.mxu2 %v470_v31 }
  0xb0   :  { %v166_v24 = vpop.f32.mrf.mxu0 }
  0xb1   :  { %v167_v25 = vadd.f32 %v485_v23, %v166_v24 }
  0xb3   :  { %v170_v26 = vmul.f32 0.01, %v167_v25 }
  0xb5   :  { %v171_v27 = vmax.f32 %v167_v25, %v170_v26 }
  0xb7   :  { %v172_v28 = vpack.c.bf16 %v171_v27, %v171_v27 }
  0xb8   :  { %v168_v29 = vpop.f32.mrf.mxu0 }
  0xb9   :  { %249 = vmatmul.bf16.vlgmr.msra.gmra.mxu1 %v172_v28 }
 0x136   :  { %v250_v33 = vpop.f32.mrf.mxu1 }
 0x137   :  { %v251_v34 = vadd.f32 %v486_v32, %v250_v33 }
 0x139   :  { %v254_v35 = vmul.f32 0.01, %v251_v34 }
 0x13b   :  { %v255_v36 = vmax.f32 %v251_v34, %v254_v35 }
 0x13d   :  { %v256_v37 = vpack.c.bf16 %v255_v36, %v255_v36 }
 0x13e   :  { %v252_v38 = vpop.f32.mrf.mxu1 }
 0x13f   :  { %333 = vmatmul.bf16.vlgmr.msra.gmra.mxu2 %v256_v37 }
 0x1c2   :  { %v334_v40 = vpop.f32.mrf.mxu2 }
 0x1c3   :  { %v335_v41 = vadd.f32 %v487_v39, %v334_v40 }
 0x1c5   :  { %338 = vst [vmem:[#allocation10] sm:$0xff] %v335_v41 }
 0x1c6   :  { %349 = dma.vmem_to_hbm [thread:$0]  %s345_s25, 128, %s347_s28, [#allocation4]  }
 0x1ca   :  { %v336_v42 = vpop.f32.mrf.mxu2 }
 0x1cb   :  { %614 = dma.done.wait [#allocation4], 128  }
 0x1cc   :  { %615 = vsyncadd [#allocation4], 4294967168 }
 0x1cd   :  { %354 = vsyncpa [#allocation3], 1 }
 0x1ce   :  { %355 = vsyncpa [#allocation6], 1 }
 0x1cf   :  { %356 = vsyncpa [#allocation9], 1 }
 0x1d0   :  { %357 = vsyncpa [#allocation4], 1 }

// kernel: tpu_custom_call.1
= control target key start
LH: loop header
LB: loop body
LE: loop exit
PB: predicated region body
PF: predicated region fallthrough
CT: control target
= control target key end

     0   :  { %12 = vsyncpa [#allocation3], 0  ;;  %s687_s0 = inlined_call_operand.hbm [shape: bf16[8,128], index: 0, kind: input, shape index: {}]   ;;  %s688_s1 = inlined_call_operand.hbm [shape: bf16[128,128], index: 1, kind: input, shape index: {}]   ;;  %s689_s2 = inlined_call_operand.vmem [shape: f32[1,128], index: 2, kind: input, shape index: {}]   ;;  %s690_s3 = inlined_call_operand.hbm [shape: bf16[128,128], index: 3, kind: input, shape index: {}]   ;;  %s691_s4 = inlined_call_operand.vmem [shape: f32[1,128], index: 4, kind: input, shape index: {}]   ;;  %s692_s5 = inlined_call_operand.hbm [shape: bf16[128,128], index: 5, kind: input, shape index: {}]   ;;  %s693_s6 = inlined_call_operand.vmem [shape: f32[1,128], index: 6, kind: input, shape index: {}]   ;;  %s694_s7 = inlined_call_operand.hbm [shape: f32[8,128], index: 7, kind: output, shape index: {}]  }
   0x1   :  { %13 = vsyncpa [#allocation6], 0 }
   0x2   :  { %14 = vsyncpa [#allocation9], 0  ;;  %s31_s26 = sshll.u32 %s688_s1, 4  ;;  %s32_s26 = int_to_ptr.hbm [resolvable:$true] %s31_s26 }
   0x3   :  { %15 = vsyncpa [#allocation4], 0  ;;  %s616_s27 = smov [#allocation5]   ;;  %s21_s8 = sshll.u32 %s687_s0, 4  ;;  %s22_s8 = int_to_ptr.hbm [resolvable:$true] %s21_s8 }
   0x4   :  { %s33_s28 = sshll.u32 %s616_s27, 4  ;;  %s617_s9 = smov 64   ;;  %s34_s28 = int_to_ptr.vmem [resolvable:$true] %s33_s28 }
   0x5   :  { %s618_s10 = smov 4   ;;  %s619_s11 = smov [#allocation2]  }
   0x6   :  { %39 = dma.hbm_to_vmem [thread:$0]  %s32_s26, 1024, %s34_s28, [#allocation6], %s617_s9, %s617_s9, %s618_s10  }
   0x7   :  { %s23_s12 = sshll.u32 %s619_s11, 4  ;;  %s46_s15 = sshll.u32 %s690_s3, 4  ;;  %s24_s12 = int_to_ptr.vmem [resolvable:$true] %s23_s12  ;;  %s47_s15 = int_to_ptr.hbm [resolvable:$true] %s46_s15 }
   0x8   :  { %26 = dma.hbm_to_vmem [thread:$0]  %s22_s8, 64, %s24_s12, [#allocation3]  }
   0x9   :  { %s61_s17 = sshll.u32 %s692_s5, 4  ;;  %s620_s18 = smov [#allocation7]   ;;  %s62_s17 = int_to_ptr.hbm [resolvable:$true] %s61_s17 }
   0xa   :  { %s48_s19 = sshll.u32 %s620_s18, 4  ;;  %s621_s0 = smov [#allocation8]   ;;  %s49_s19 = int_to_ptr.vmem [resolvable:$true] %s48_s19 }
   0xb   :  { %54 = dma.hbm_to_vmem [thread:$0]  %s47_s15, 1024, %s49_s19, [#allocation6], %s617_s9, %s617_s9, %s618_s10  }
   0xc   :  { %s63_s20 = sshll.u32 %s621_s0, 4  ;;  %s64_s20 = int_to_ptr.vmem [resolvable:$true] %s63_s20 }
   0xd   :  { %69 = dma.hbm_to_vmem [thread:$0]  %s62_s17, 1024, %s64_s20, [#allocation9], %s617_s9, %s617_s9, %s618_s10  }
   0xe   :  { %608 = dma.done.wait [#allocation3], 64  }
   0xf   :  { %609 = vsyncadd [#allocation3], 4294967232 }
  0x10   :  { %610 = dma.done.wait [#allocation6], 2048  }
  0x11   :  { %611 = vsyncadd [#allocation6], 4294965248 }
  0x12   :  { %612 = dma.done.wait [#allocation9], 1024  }
  0x13   :  { %613 = vsyncadd [#allocation9], 4294966272  ;;  %v461_v0 = vld [vmem:[#allocation5 + $0x38] sm:$0xff]  ;;  %v460_v1 = vld [vmem:[#allocation5 + $0x30] sm:$0xff]  ;;  %s622_s24 = smov [#allocation10]   ;;  %s346_s28 = sshll.u32 %s694_s7, 4  ;;  %s347_s28 = int_to_ptr.hbm [resolvable:$true] %s346_s28 }
  0x14   :  { %157 = vmatpush.bf16.msra.mxu0 %v461_v0  ;;  %v469_v2 = vld [vmem:[#allocation7 + $0x38] sm:$0xff]  ;;  %v468_v3 = vld [vmem:[#allocation7 + $0x30] sm:$0xff]  ;;  %v459_v4 = vld [vmem:[#allocation5 + $0x28] sm:$0xff]  ;;  %s344_s25 = sshll.u32 %s622_s24, 4  ;;  %s345_s25 = int_to_ptr.vmem [resolvable:$true] %s344_s25 }
  0x15   :  { %241 = vmatpush.bf16.msra.mxu1 %v469_v2  ;;  %v467_v5 = vld [vmem:[#allocation7 + $0x28] sm:$0xff]  ;;  %v458_v6 = vld [vmem:[#allocation5 + $0x20] sm:$0xff]  ;;  %v457_v8 = vld [vmem:[#allocation5 + $0x18] sm:$0xff] }
  0x16   :  { %v466_v7 = vld [vmem:[#allocation7 + $0x20] sm:$0xff]  ;;  %v465_v9 = vld [vmem:[#allocation7 + $0x18] sm:$0xff]  ;;  %v456_v10 = vld [vmem:[#allocation5 + $0x10] sm:$0xff] }
  0x17   :  { %v464_v11 = vld [vmem:[#allocation7 + $0x10] sm:$0xff]  ;;  %v455_v12 = vld [vmem:[#allocation5 + $0x8] sm:$0xff]  ;;  %v454_v13 = vld [vmem:[#allocation5] sm:$0xff] }
  0x18   :  { %158 = vmatpush.bf16.msra.mxu0 %v460_v1  ;;  %v88_v14 = vld [vmem:[#allocation2] sm:$0xf]  ;;  %v463_v15 = vld [vmem:[#allocation7 + $0x8] sm:$0xff]  ;;  %v462_v16 = vld [vmem:[#allocation7] sm:$0xff] }
  0x19   :  { %242 = vmatpush.bf16.msra.mxu1 %v468_v3  ;;  %v477_v17 = vld [vmem:[#allocation8 + $0x38] sm:$0xff]  ;;  %v476_v18 = vld [vmem:[#allocation8 + $0x30] sm:$0xff]  ;;  %v475_v19 = vld [vmem:[#allocation8 + $0x28] sm:$0xff] }
  0x1a   :  { %325 = vmatpush.bf16.msra.mxu2 %v477_v17  ;;  %v474_v20 = vld [vmem:[#allocation8 + $0x20] sm:$0xff]  ;;  %v473_v21 = vld [vmem:[#allocation8 + $0x18] sm:$0xff]  ;;  %v472_v22 = vld [vmem:[#allocation8 + $0x10] sm:$0xff] }
  0x1b   :  { %v485_v23 = vld [vmem:[%s689_s2] ss:$0 sm:$0xff]  ;;  %v471_v30 = vld [vmem:[#allocation8 + $0x8] sm:$0xff]  ;;  %v470_v31 = vld [vmem:[#allocation8] sm:$0xff] }
  0x1c   :  { %159 = vmatpush.bf16.msra.mxu0 %v459_v4  ;;  %v486_v32 = vld [vmem:[%s691_s4] ss:$0 sm:$0xff] }
  0x1d   :  { %243 = vmatpush.bf16.msra.mxu1 %v467_v5  ;;  %v487_v39 = vld [vmem:[%s693_s6] ss:$0 sm:$0xff] }
  0x1e   :  { %326 = vmatpush.bf16.msra.mxu2 %v476_v18 }
  0x20   :  { %160 = vmatpush.bf16.msra.mxu0 %v458_v6 }
  0x21   :  { %244 = vmatpush.bf16.msra.mxu1 %v466_v7 }
  0x22   :  { %327 = vmatpush.bf16.msra.mxu2 %v475_v19 }
  0x24   :  { %161 = vmatpush.bf16.msra.mxu0 %v457_v8 }
  0x25   :  { %245 = vmatpush.bf16.msra.mxu1 %v465_v9 }
  0x26   :  { %328 = vmatpush.bf16.msra.mxu2 %v474_v20 }
  0x28   :  { %162 = vmatpush.bf16.msra.mxu0 %v456_v10 }
  0x29   :  { %246 = vmatpush.bf16.msra.mxu1 %v464_v11 }
  0x2a   :  { %329 = vmatpush.bf16.msra.mxu2 %v473_v21 }
  0x2c   :  { %163 = vmatpush.bf16.msra.mxu0 %v455_v12 }
  0x2d   :  { %247 = vmatpush.bf16.msra.mxu1 %v463_v15 }
  0x2e   :  { %330 = vmatpush.bf16.msra.mxu2 %v472_v22 }
  0x30   :  { %164 = vmatpush.bf16.msra.mxu0 %v454_v13 }
  0x31   :  { %248 = vmatpush.bf16.msra.mxu1 %v462_v16 }
  0x32   :  { %331 = vmatpush.bf16.msra.mxu2 %v471_v30 }
  0x33   :  { %165 = vmatmul.bf16.vlgmr.msra.gmra.mxu0 %v88_v14 }
  0x36   :  { %332 = vmatpush.bf16.msra.mxu2 %v470_v31 }
  0xb0   :  { %v166_v24 = vpop.f32.mrf.mxu0 }
  0xb1   :  { %v167_v25 = vadd.f32 %v485_v23, %v166_v24 }
  0xb3   :  { %v170_v26 = vmul.f32 0.01, %v167_v25 }
  0xb5   :  { %v171_v27 = vmax.f32 %v167_v25, %v170_v26 }
  0xb7   :  { %v172_v28 = vpack.c.bf16 %v171_v27, %v171_v27 }
  0xb8   :  { %v168_v29 = vpop.f32.mrf.mxu0 }
  0xb9   :  { %249 = vmatmul.bf16.vlgmr.msra.gmra.mxu1 %v172_v28 }
 0x136   :  { %v250_v33 = vpop.f32.mrf.mxu1 }
 0x137   :  { %v251_v34 = vadd.f32 %v486_v32, %v250_v33 }
 0x139   :  { %v254_v35 = vmul.f32 0.01, %v251_v34 }
 0x13b   :  { %v255_v36 = vmax.f32 %v251_v34, %v254_v35 }
 0x13d   :  { %v256_v37 = vpack.c.bf16 %v255_v36, %v255_v36 }
 0x13e   :  { %v252_v38 = vpop.f32.mrf.mxu1 }
 0x13f   :  { %333 = vmatmul.bf16.vlgmr.msra.gmra.mxu2 %v256_v37 }
 0x1c2   :  { %v334_v40 = vpop.f32.mrf.mxu2 }
 0x1c3   :  { %v335_v41 = vadd.f32 %v487_v39, %v334_v40 }
 0x1c5   :  { %338 = vst [vmem:[#allocation10] sm:$0xff] %v335_v41 }
 0x1c6   :  { %349 = dma.vmem_to_hbm [thread:$0]  %s345_s25, 128, %s347_s28, [#allocation4]  }
 0x1ca   :  { %v336_v42 = vpop.f32.mrf.mxu2 }
 0x1cb   :  { %614 = dma.done.wait [#allocation4], 128  }
 0x1cc   :  { %615 = vsyncadd [#allocation4], 4294967168 }
 0x1cd   :  { %354 = vsyncpa [#allocation3], 1 }
 0x1ce   :  { %355 = vsyncpa [#allocation6], 1 }
 0x1cf   :  { %356 = vsyncpa [#allocation9], 1 }
 0x1d0   :  { %357 = vsyncpa [#allocation4], 1 }

</bundles_post_ra>
